<compile_context>
chip_gen: v5e
topology: v5e:2x2
jax: 0.10.0
libtpu: 0.0.40
codegen_flags: <defaults>
</compile_context>

<pallas_src>
import numpy as np
import jax
import jax.numpy as jnp
from jax.experimental import pallas as pl
from jax.experimental.pallas import tpu as pltpu


# --------------------------------------------------------------------------
# 1-D bilinear interpolation matrix, matching PyTorch's
# F.interpolate(mode='bilinear', align_corners=False).
# --------------------------------------------------------------------------
def _bilinear_matrix(out_size: int, in_size: int) -> np.ndarray:
    A = np.zeros((out_size, in_size), dtype=np.float32)
    scale = in_size / out_size
    for i in range(out_size):
        src = scale * (i + 0.5) - 0.5
        src = max(src, 0.0)                       # PyTorch clamps negative src
        x0 = min(int(np.floor(src)), in_size - 1)
        x1 = min(x0 + 1, in_size - 1)
        l1 = src - x0
        A[i, x0] += 1.0 - l1
        A[i, x1] += l1
    return A


def _vmem_capacity_bytes() -> int:
    """Per-core VMEM capacity; falls back to the smallest (v7x) figure."""
    try:
        return int(pltpu.get_tpu_info().vmem_capacity_bytes)
    except Exception:
        return 64 * 1024 * 1024


def _pick_tile_h(H, splits, fixed_bytes, per_row_bytes, budget):
    """Largest legal tile_h (multiple of 8 dividing H, or H itself) in budget."""
    cands = sorted({th for th in range(8, H + 1, 8) if H % th == 0} | {H})
    cands = [th for th in cands if (H // th) % splits == 0]
    if not cands:
        raise ValueError("no legal tile_h for this H / splits combination")
    best = cands[0]
    for th in cands:                               # ascending: keep largest fit
        if fixed_bytes + th * per_row_bytes <= budget:
            best = th
    return best


# --------------------------------------------------------------------------
# Pallas kernel factory. One grid step == (image n, split p, row tile t).
#   x_ref   : (1, Cin, Mf)      low-res features, channel-major, Mf = Hf*Wf
#   wb/bb   : body 1x1 conv     (Cb, Cin), (Cb, 1)
#   wh/bh   : head 1x1 conv     (Ch, Cb),  (Ch, 1)
#   wc/bc   : concatenated classifier convs (Ctot, Ch), (Ctot, 1)
#   ah_ref  : (tile_h, Hf)      rows of A_h for this output tile (interp_dtype)
#   awt_ref : (Wf, W)           A_w transposed (interp_dtype)
#   o_ref   : (1, Ctot, tile_h, W)  NCHW output tile (lane dim = W)
#   lg3_ref : VMEM (Hf, Ctot, Wf)   low-res logits, per-class grids
#   up_ref  : VMEM (Hf, Ctot*W)     W-pass result, class-major columns
# --------------------------------------------------------------------------
def _make_kernel(Hf, Wf, W, Ctot, interp_dtype):
    def kernel(x_ref, wb_ref, bb_ref, wh_ref, bh_ref, wc_ref, bc_ref,
               ah_ref, awt_ref, o_ref, lg3_ref, up_ref):
        # The row-tile axis MUST stay the last ("arbitrary", innermost) grid
        # axis: t == 0 then runs before every other tile of the same
        # (image, split), so the scratches below are always fresh.
        t = pl.program_id(2)

        # ---- once per (image, split): channel path + class-batched W-pass --
        @pl.when(t == 0)
        def _():
            x2d = x_ref[0]                                          # (Cin, Mf)
            xb = jnp.maximum(
                jnp.dot(wb_ref[...], x2d,
                        preferred_element_type=jnp.float32) + bb_ref[...], 0.0)
            xp = jnp.maximum(
                jnp.dot(wh_ref[...], xb,
                        preferred_element_type=jnp.float32) + bh_ref[...], 0.0)
            lg = (jnp.dot(wc_ref[...], xp,
                          preferred_element_type=jnp.float32)
                  + bc_ref[...]).astype(interp_dtype)               # (Ctot, Mf)

            # Relayout (Ctot, Hf*Wf) -> per-class (Hf, Wf) grids through the
            # scratch ref: Hf full-slab stores (no masked row-by-row scatter).
            for f in range(Hf):
                lg3_ref[f] = lg[:, f * Wf:(f + 1) * Wf]             # (Ctot, Wf)

            # W-pass per class, packed class-major into (Hf, Ctot*W) so the
            # per-tile H-pass below is a single matmul.  Runs once per image.
            awt = awt_ref[...]                                      # (Wf, W)
            for c in range(Ctot):
                upw = jnp.dot(lg3_ref[:, c, :], awt,
                              preferred_element_type=jnp.float32)   # (Hf, W)
                up_ref[:, c * W:(c + 1) * W] = upw.astype(interp_dtype)

        # ---- every tile: ONE batched H-pass matmul --------------------------
        out2 = jnp.dot(ah_ref[...], up_ref[...],
                       preferred_element_type=jnp.float32)  # (tile_h, Ctot*W)
        out2 = out2.astype(o_ref.dtype)
        # NCHW stores: when W % 128 == 0 (realistic resolutions) these slices
        # and stores are vreg-aligned and unmasked; no extra HBM transpose
        # pass over the output is needed.  At toy W < 128 they are masked but
        # tiny.
        for c in range(Ctot):
            o_ref[0, c] = out2[:, c * W:(c + 1) * W]

    return kernel


# --------------------------------------------------------------------------
# Wrapper: layout prep + pallas_call (fused under one jit).
# --------------------------------------------------------------------------
def incremental_seg_forward(x_nchw, params, *, tile_h=None, splits=1,
                            interp_dtype=jnp.float32, out_dtype=jnp.float32):
    """Forward pass of IncrementalSegmentationModule (ret_intermediate=False)."""
    wb, bb, wh, bh, wc, bc = params
    N, Cin, H, W = x_nchw.shape
    Cb, Ch, Ctot = wb.shape[0], wh.shape[0], wc.shape[0]

    # Synthetic "body" = stride-2 1x1 conv + ReLU: the stride-2 subsample is
    # fused into the same jit as the pallas_call; the matmuls run in-kernel.
    # TODO(synk): fold the stride-2 slice into the kernel (pl.ds stride) to
    # save one HBM pass over the feature map; secondary to the store-side wins.
    x_ds = x_nchw[:, :, ::2, ::2].astype(jnp.float32)
    Hf, Wf = int(x_ds.shape[2]), int(x_ds.shape[3])
    Mf = Hf * Wf
    x_flat = x_ds.reshape(N, Cin, Mf)                  # channel-major rows

    itp = np.dtype(interp_dtype).itemsize
    obytes = np.dtype(out_dtype).itemsize

    # Interp matrices pre-cast once in the wrapper (hoisted per-tile casts).
    a_h = jnp.asarray(_bilinear_matrix(H, Hf)).astype(interp_dtype)   # (H, Hf)
    a_wt = jnp.asarray(_bilinear_matrix(W, Wf).T).astype(interp_dtype)  # (Wf, W)

    # ---- VMEM-budgeted tiling (re-derived per chip: 128 MiB v5e/v6e, 64 v7x)
    vmem_cap = _vmem_capacity_bytes()
    fixed = (2 * Cin * Mf * 4                                        # x (2 bufs)
             + 2 * 4 * (Cb * Cin + Cb + Ch * Cb + Ch + Ctot * Ch + Ctot)
             + 2 * Wf * W * itp                                      # a_wt
             + Hf * Ctot * Wf * itp                                  # lg3 scratch
             + Hf * Ctot * W * itp)                                  # up scratch
    per_row = 2 * Hf * itp + 2 * Ctot * W * obytes                   # a_h + out blk
    budget = int(0.7 * vmem_cap)
    if tile_h is None:
        tile_h = _pick_tile_h(H, splits, fixed, per_row, budget)
    if H % tile_h != 0 or (tile_h % 8 != 0 and tile_h != H):
        raise ValueError("tile_h must divide H and be a multiple of 8 (or == H)")
    n_tiles = H // tile_h
    if n_tiles % splits != 0:
        raise ValueError("splits must divide H // tile_h")
    tps = n_tiles // splits
    vmem_limit = int(min(0.8 * vmem_cap, 100 * 1024 * 1024))

    kernel = _make_kernel(Hf, Wf, W, Ctot, interp_dtype)

    # Advisory cost hint for XLA scheduling around the custom call.
    flops = (2 * N * splits * Mf * (Cin * Cb + Cb * Ch + Ch * Ctot)
             + 2 * N * splits * Ctot * Hf * Wf * W
             + 2 * N * Ctot * H * Hf * W)
    bytes_accessed = (4 * N * Cin * Mf + obytes * N * Ctot * H * W
                      + 4 * (Cb * Cin + Cb + Ch * Cb + Ch + Ctot * Ch + Ctot)
                      + itp * (H * Hf + Wf * W))

    out = pl.pallas_call(
        kernel,
        out_shape=jax.ShapeDtypeStruct((N, Ctot, H, W), out_dtype),
        grid_spec=pltpu.PrefetchScalarGridSpec(
            num_scalar_prefetch=0,
            grid=(N, splits, tps),
            in_specs=[
                pl.BlockSpec((1, Cin, Mf), lambda n, p, t: (n, 0, 0)),
                pl.BlockSpec((Cb, Cin), lambda n, p, t: (0, 0)),
                pl.BlockSpec((Cb, 1), lambda n, p, t: (0, 0)),
                pl.BlockSpec((Ch, Cb), lambda n, p, t: (0, 0)),
                pl.BlockSpec((Ch, 1), lambda n, p, t: (0, 0)),
                pl.BlockSpec((Ctot, Ch), lambda n, p, t: (0, 0)),
                pl.BlockSpec((Ctot, 1), lambda n, p, t: (0, 0)),
                pl.BlockSpec((tile_h, Hf), lambda n, p, t: (p * tps + t, 0)),
                pl.BlockSpec((Wf, W), lambda n, p, t: (0, 0)),
            ],
            out_specs=pl.BlockSpec((1, Ctot, tile_h, W),
                                   lambda n, p, t: (n, 0, p * tps + t, 0)),
            scratch_shapes=[
                pltpu.VMEM((Hf, Ctot, Wf), interp_dtype),   # low-res logits
                pltpu.VMEM((Hf, Ctot * W), interp_dtype),   # W-pass, class-major
            ],
        ),
        compiler_params=pltpu.CompilerParams(
            dimension_semantics=("parallel", "parallel", "arbitrary"),
            vmem_limit_bytes=vmem_limit),
        cost_estimate=pl.CostEstimate(flops=flops, transcendentals=0,
                                      bytes_accessed=bytes_accessed),
    )(x_flat, wb, bb, wh, bh, wc, bc, a_h, a_wt)

    return out, {}


# --------------------------------------------------------------------------
# Pure-JAX reference (PyTorch op order: convs -> concat -> interpolate).
# --------------------------------------------------------------------------
def _reference_forward(x_nchw, params):
    wb, bb, wh, bh, wc, bc = params
    N, Cin, H, W = x_nchw.shape
    hi = jax.lax.Precision.HIGHEST
    x_ds = x_nchw[:, :, ::2, ::2].astype(jnp.float32)
    Hf, Wf = x_ds.shape[2], x_ds.shape[3]
    xb = jnp.maximum(jnp.einsum('oc,nchw->nohw', wb, x_ds, precision=hi)
                     + bb.reshape(1, -1, 1, 1), 0.0)
    xp = jnp.maximum(jnp.einsum('oc,nchw->nohw', wh, xb, precision=hi)
                     + bh.reshape(1, -1, 1, 1), 0.0)
    lg = (jnp.einsum('oc,nchw->nohw', wc, xp, precision=hi)
          + bc.reshape(1, -1, 1, 1))
    A_h = jnp.asarray(_bilinear_matrix(H, Hf))
    A_w = jnp.asarray(_bilinear_matrix(W, Wf))
    up = jnp.einsum('hf,ncfw->nchw', A_h, lg, precision=hi)
    out = jnp.einsum('wg,nchg->nchw', A_w, up, precision=hi)
    return out


# --------------------------------------------------------------------------
# Deterministic parameter construction (channel-major weights, (C,1) biases).
# --------------------------------------------------------------------------
def make_params(key, in_channels, body_channels, head_channels, classes):
    ks = jax.random.split(key, 6)
    tot = sum(classes)
    wb = 0.1 * jax.random.normal(ks[0], (body_channels, in_channels), jnp.float32)
    bb = 0.1 * jax.random.normal(ks[1], (body_channels, 1), jnp.float32)
    wh = 0.1 * jax.random.normal(ks[2], (head_channels, body_channels), jnp.float32)
    bh = 0.1 * jax.random.normal(ks[3], (head_channels, 1), jnp.float32)
    # one 1x1 conv per task, concatenated along the output-channel dim
    # (== torch.cat(out, dim=1) over the nn.ModuleList of classifiers)
    wc = 0.1 * jax.random.normal(ks[4], (tot, head_channels), jnp.float32)
    bc = 0.1 * jax.random.normal(ks[5], (tot, 1), jnp.float32)
    return (wb, bb, wh, bh, wc, bc)


if __name__ == "__main__":
    key = jax.random.PRNGKey(0)
    kx, kp = jax.random.split(key)

    # small shapes consistent with the module's forward
    N, Cin, H, W = 2, 4, 16, 16
    body_channels, head_channels = 32, 32
    classes = [3, 2]                      # incremental tasks -> tot_classes = 5

    x = jax.random.normal(kx, (N, Cin, H, W), jnp.float32)
    params = make_params(kp, Cin, body_channels, head_channels, classes)

    fwd = jax.jit(incremental_seg_forward,
                  static_argnames=("tile_h", "splits", "interp_dtype",
                                   "out_dtype"))

    ref = _reference_forward(x, params)

    # 1) f32 path, explicit row tiling (exercises scratch reuse at t > 0)
    out_f32, extras = fwd(x, params, tile_h=8)
    out_f32 = jax.block_until_ready(out_f32)
    assert out_f32.shape == (N, sum(classes), H, W)
    np.testing.assert_allclose(np.asarray(out_f32), np.asarray(ref),
                               rtol=1e-2, atol=1e-3)

    # 2) f32 path, tile_h auto-derived from the chip's VMEM capacity
    out_auto, _ = fwd(x, params)
    out_auto = jax.block_until_ready(out_auto)
    np.testing.assert_allclose(np.asarray(out_auto), np.asarray(ref),
                               rtol=1e-2, atol=1e-3)

    # 3) bf16 interpolation operands + split row-tile axis (v6e/v7x path),
    #    f32 accumulation throughout
    out_bf16, _ = fwd(x, params, tile_h=8, splits=2,
                      interp_dtype=jnp.bfloat16)
    out_bf16 = jax.block_until_ready(out_bf16)
    np.testing.assert_allclose(np.asarray(out_bf16), np.asarray(ref),
                               rtol=5e-2, atol=5e-2)

    print("KERNEL_OK")
</pallas_src>

<mosaic_0001>
module attributes {stable_mosaic.version = 11 : i64} {
  func.func @kernel(%arg0: i32, %arg1: i32, %arg2: i32, %arg3: memref<1x4x64xf32, #tpu.memory_space<vmem>>, %arg4: memref<32x4xf32, #tpu.memory_space<vmem>>, %arg5: memref<32x1xf32, #tpu.memory_space<vmem>>, %arg6: memref<32x32xf32, #tpu.memory_space<vmem>>, %arg7: memref<32x1xf32, #tpu.memory_space<vmem>>, %arg8: memref<5x32xf32, #tpu.memory_space<vmem>>, %arg9: memref<5x1xf32, #tpu.memory_space<vmem>>, %arg10: memref<8x8xf32, #tpu.memory_space<vmem>>, %arg11: memref<8x16xf32, #tpu.memory_space<vmem>>, %arg12: memref<1x5x8x16xf32, #tpu.memory_space<vmem>>, %arg13: memref<8x5x8xf32, #tpu.memory_space<vmem>>, %arg14: memref<8x80xf32, #tpu.memory_space<vmem>>) attributes {dimension_semantics = [#tpu.dimension_semantics<parallel>, #tpu.dimension_semantics<parallel>, #tpu.dimension_semantics<arbitrary>], iteration_bounds = array<i64: 2, 1, 2>, scalar_prefetch = 0 : i64, scratch_operands = 2 : i64, tpu.core_type = #tpu.core_type<tc>, window_params = [{transform_indices = @transform_0, window_bounds = array<i64: 1, 4, 64>}, {pipeline_mode = #tpu.pipeline_mode<synchronous>, transform_indices = @transform_1, window_bounds = array<i64: 32, 4>}, {pipeline_mode = #tpu.pipeline_mode<synchronous>, transform_indices = @transform_2, window_bounds = array<i64: 32, 1>}, {pipeline_mode = #tpu.pipeline_mode<synchronous>, transform_indices = @transform_3, window_bounds = array<i64: 32, 32>}, {pipeline_mode = #tpu.pipeline_mode<synchronous>, transform_indices = @transform_4, window_bounds = array<i64: 32, 1>}, {pipeline_mode = #tpu.pipeline_mode<synchronous>, transform_indices = @transform_5, window_bounds = array<i64: 5, 32>}, {pipeline_mode = #tpu.pipeline_mode<synchronous>, transform_indices = @transform_6, window_bounds = array<i64: 5, 1>}, {transform_indices = @transform_7, window_bounds = array<i64: 8, 8>}, {pipeline_mode = #tpu.pipeline_mode<synchronous>, transform_indices = @transform_8, window_bounds = array<i64: 8, 16>}, {transform_indices = @transform_9, window_bounds = array<i64: 1, 5, 8, 16>}]} {
    %c0_i32 = arith.constant 0 : i32
    %0 = arith.cmpi eq, %arg2, %c0_i32 : i32
    %1 = arith.extui %0 : i1 to i32
    %c0_i32_0 = arith.constant 0 : i32
    %2 = arith.cmpi ne, %1, %c0_i32_0 : i32
    scf.if %2 {
      %c0_20 = arith.constant 0 : index
      %c0_21 = arith.constant 0 : index
      %c0_22 = arith.constant 0 : index
      %26 = vector.load %arg3[%c0_20, %c0_21, %c0_22] : memref<1x4x64xf32, #tpu.memory_space<vmem>>, vector<1x4x64xf32>
      %27 = vector.shape_cast %26 : vector<1x4x64xf32> to vector<4x64xf32>
      %c0_23 = arith.constant 0 : index
      %c0_24 = arith.constant 0 : index
      %28 = vector.load %arg4[%c0_23, %c0_24] : memref<32x4xf32, #tpu.memory_space<vmem>>, vector<32x4xf32>
      %cst_25 = arith.constant dense<0.000000e+00> : vector<32x64xf32>
      %29 = tpu.matmul %28, %27, %cst_25 {dimension_numbers = #tpu.dot_dimension_numbers<[1], [0], [0], [1], [0, 0, 1, 1], [], []>} : vector<32x4xf32>, vector<4x64xf32>, vector<32x64xf32> -> vector<32x64xf32>
      %c0_26 = arith.constant 0 : index
      %c0_27 = arith.constant 0 : index
      %30 = vector.load %arg5[%c0_26, %c0_27] : memref<32x1xf32, #tpu.memory_space<vmem>>, vector<32x1xf32>
      %31 = vector.broadcast %30 : vector<32x1xf32> to vector<32x64xf32>
      %32 = arith.addf %29, %31 : vector<32x64xf32>
      %cst_28 = arith.constant 0.000000e+00 : f32
      %33 = vector.broadcast %cst_28 : f32 to vector<32x64xf32>
      %34 = arith.maximumf %32, %33 : vector<32x64xf32>
      %c0_29 = arith.constant 0 : index
      %c0_30 = arith.constant 0 : index
      %35 = vector.load %arg6[%c0_29, %c0_30] : memref<32x32xf32, #tpu.memory_space<vmem>>, vector<32x32xf32>
      %cst_31 = arith.constant dense<0.000000e+00> : vector<32x64xf32>
      %36 = tpu.matmul %35, %34, %cst_31 {dimension_numbers = #tpu.dot_dimension_numbers<[1], [0], [0], [1], [0, 0, 1, 1], [], []>} : vector<32x32xf32>, vector<32x64xf32>, vector<32x64xf32> -> vector<32x64xf32>
      %c0_32 = arith.constant 0 : index
      %c0_33 = arith.constant 0 : index
      %37 = vector.load %arg7[%c0_32, %c0_33] : memref<32x1xf32, #tpu.memory_space<vmem>>, vector<32x1xf32>
      %38 = vector.broadcast %37 : vector<32x1xf32> to vector<32x64xf32>
      %39 = arith.addf %36, %38 : vector<32x64xf32>
      %cst_34 = arith.constant 0.000000e+00 : f32
      %40 = vector.broadcast %cst_34 : f32 to vector<32x64xf32>
      %41 = arith.maximumf %39, %40 : vector<32x64xf32>
      %c0_35 = arith.constant 0 : index
      %c0_36 = arith.constant 0 : index
      %42 = vector.load %arg8[%c0_35, %c0_36] : memref<5x32xf32, #tpu.memory_space<vmem>>, vector<5x32xf32>
      %cst_37 = arith.constant dense<0.000000e+00> : vector<5x64xf32>
      %43 = tpu.matmul %42, %41, %cst_37 {dimension_numbers = #tpu.dot_dimension_numbers<[1], [0], [0], [1], [0, 0, 1, 1], [], []>} : vector<5x32xf32>, vector<32x64xf32>, vector<5x64xf32> -> vector<5x64xf32>
      %c0_38 = arith.constant 0 : index
      %c0_39 = arith.constant 0 : index
      %44 = vector.load %arg9[%c0_38, %c0_39] : memref<5x1xf32, #tpu.memory_space<vmem>>, vector<5x1xf32>
      %45 = vector.broadcast %44 : vector<5x1xf32> to vector<5x64xf32>
      %46 = arith.addf %43, %45 : vector<5x64xf32>
      %47 = vector.extract_strided_slice %46 {offsets = [0, 0], sizes = [5, 8], strides = [1, 1]} : vector<5x64xf32> to vector<5x8xf32>
      %c0_40 = arith.constant 0 : index
      %c0_41 = arith.constant 0 : index
      %c0_42 = arith.constant 0 : index
      %48 = vector.load %arg13[%c0_40, %c0_41, %c0_42] : memref<8x5x8xf32, #tpu.memory_space<vmem>>, vector<1x5x8xf32>
      %49 = vector.shape_cast %48 : vector<1x5x8xf32> to vector<5x8xf32>
      %50 = vector.shape_cast %47 : vector<5x8xf32> to vector<1x5x8xf32>
      tpu.vector_store %arg13[%c0_40, %c0_41, %c0_42], %50 {strides = array<i32>} : memref<8x5x8xf32, #tpu.memory_space<vmem>>, vector<1x5x8xf32>,
      %51 = vector.extract_strided_slice %46 {offsets = [0, 8], sizes = [5, 8], strides = [1, 1]} : vector<5x64xf32> to vector<5x8xf32>
      %c1_43 = arith.constant 1 : index
      %c0_44 = arith.constant 0 : index
      %c0_45 = arith.constant 0 : index
      %52 = vector.load %arg13[%c1_43, %c0_44, %c0_45] : memref<8x5x8xf32, #tpu.memory_space<vmem>>, vector<1x5x8xf32>
      %53 = vector.shape_cast %52 : vector<1x5x8xf32> to vector<5x8xf32>
      %54 = vector.shape_cast %51 : vector<5x8xf32> to vector<1x5x8xf32>
      tpu.vector_store %arg13[%c1_43, %c0_44, %c0_45], %54 {strides = array<i32>} : memref<8x5x8xf32, #tpu.memory_space<vmem>>, vector<1x5x8xf32>,
      %55 = vector.extract_strided_slice %46 {offsets = [0, 16], sizes = [5, 8], strides = [1, 1]} : vector<5x64xf32> to vector<5x8xf32>
      %c2_46 = arith.constant 2 : index
      %c0_47 = arith.constant 0 : index
      %c0_48 = arith.constant 0 : index
      %56 = vector.load %arg13[%c2_46, %c0_47, %c0_48] : memref<8x5x8xf32, #tpu.memory_space<vmem>>, vector<1x5x8xf32>
      %57 = vector.shape_cast %56 : vector<1x5x8xf32> to vector<5x8xf32>
      %58 = vector.shape_cast %55 : vector<5x8xf32> to vector<1x5x8xf32>
      tpu.vector_store %arg13[%c2_46, %c0_47, %c0_48], %58 {strides = array<i32>} : memref<8x5x8xf32, #tpu.memory_space<vmem>>, vector<1x5x8xf32>,
      %59 = vector.extract_strided_slice %46 {offsets = [0, 24], sizes = [5, 8], strides = [1, 1]} : vector<5x64xf32> to vector<5x8xf32>
      %c3_49 = arith.constant 3 : index
      %c0_50 = arith.constant 0 : index
      %c0_51 = arith.constant 0 : index
      %60 = vector.load %arg13[%c3_49, %c0_50, %c0_51] : memref<8x5x8xf32, #tpu.memory_space<vmem>>, vector<1x5x8xf32>
      %61 = vector.shape_cast %60 : vector<1x5x8xf32> to vector<5x8xf32>
      %62 = vector.shape_cast %59 : vector<5x8xf32> to vector<1x5x8xf32>
      tpu.vector_store %arg13[%c3_49, %c0_50, %c0_51], %62 {strides = array<i32>} : memref<8x5x8xf32, #tpu.memory_space<vmem>>, vector<1x5x8xf32>,
      %63 = vector.extract_strided_slice %46 {offsets = [0, 32], sizes = [5, 8], strides = [1, 1]} : vector<5x64xf32> to vector<5x8xf32>
      %c4_52 = arith.constant 4 : index
      %c0_53 = arith.constant 0 : index
      %c0_54 = arith.constant 0 : index
      %64 = vector.load %arg13[%c4_52, %c0_53, %c0_54] : memref<8x5x8xf32, #tpu.memory_space<vmem>>, vector<1x5x8xf32>
      %65 = vector.shape_cast %64 : vector<1x5x8xf32> to vector<5x8xf32>
      %66 = vector.shape_cast %63 : vector<5x8xf32> to vector<1x5x8xf32>
      tpu.vector_store %arg13[%c4_52, %c0_53, %c0_54], %66 {strides = array<i32>} : memref<8x5x8xf32, #tpu.memory_space<vmem>>, vector<1x5x8xf32>,
      %67 = vector.extract_strided_slice %46 {offsets = [0, 40], sizes = [5, 8], strides = [1, 1]} : vector<5x64xf32> to vector<5x8xf32>
      %c5 = arith.constant 5 : index
      %c0_55 = arith.constant 0 : index
      %c0_56 = arith.constant 0 : index
      %68 = vector.load %arg13[%c5, %c0_55, %c0_56] : memref<8x5x8xf32, #tpu.memory_space<vmem>>, vector<1x5x8xf32>
      %69 = vector.shape_cast %68 : vector<1x5x8xf32> to vector<5x8xf32>
      %70 = vector.shape_cast %67 : vector<5x8xf32> to vector<1x5x8xf32>
      tpu.vector_store %arg13[%c5, %c0_55, %c0_56], %70 {strides = array<i32>} : memref<8x5x8xf32, #tpu.memory_space<vmem>>, vector<1x5x8xf32>,
      %71 = vector.extract_strided_slice %46 {offsets = [0, 48], sizes = [5, 8], strides = [1, 1]} : vector<5x64xf32> to vector<5x8xf32>
      %c6 = arith.constant 6 : index
      %c0_57 = arith.constant 0 : index
      %c0_58 = arith.constant 0 : index
      %72 = vector.load %arg13[%c6, %c0_57, %c0_58] : memref<8x5x8xf32, #tpu.memory_space<vmem>>, vector<1x5x8xf32>
      %73 = vector.shape_cast %72 : vector<1x5x8xf32> to vector<5x8xf32>
      %74 = vector.shape_cast %71 : vector<5x8xf32> to vector<1x5x8xf32>
      tpu.vector_store %arg13[%c6, %c0_57, %c0_58], %74 {strides = array<i32>} : memref<8x5x8xf32, #tpu.memory_space<vmem>>, vector<1x5x8xf32>,
      %75 = vector.extract_strided_slice %46 {offsets = [0, 56], sizes = [5, 8], strides = [1, 1]} : vector<5x64xf32> to vector<5x8xf32>
      %c7 = arith.constant 7 : index
      %c0_59 = arith.constant 0 : index
      %c0_60 = arith.constant 0 : index
      %76 = vector.load %arg13[%c7, %c0_59, %c0_60] : memref<8x5x8xf32, #tpu.memory_space<vmem>>, vector<1x5x8xf32>
      %77 = vector.shape_cast %76 : vector<1x5x8xf32> to vector<5x8xf32>
      %78 = vector.shape_cast %75 : vector<5x8xf32> to vector<1x5x8xf32>
      tpu.vector_store %arg13[%c7, %c0_59, %c0_60], %78 {strides = array<i32>} : memref<8x5x8xf32, #tpu.memory_space<vmem>>, vector<1x5x8xf32>,
      %c0_61 = arith.constant 0 : index
      %c0_62 = arith.constant 0 : index
      %79 = vector.load %arg11[%c0_61, %c0_62] : memref<8x16xf32, #tpu.memory_space<vmem>>, vector<8x16xf32>
      %c0_63 = arith.constant 0 : index
      %c0_64 = arith.constant 0 : index
      %c0_65 = arith.constant 0 : index
      %80 = vector.load %arg13[%c0_63, %c0_64, %c0_65] : memref<8x5x8xf32, #tpu.memory_space<vmem>>, vector<8x1x8xf32>
      %81 = vector.shape_cast %80 : vector<8x1x8xf32> to vector<8x8xf32>
      %cst_66 = arith.constant dense<0.000000e+00> : vector<8x16xf32>
      %82 = tpu.matmul %81, %79, %cst_66 {dimension_numbers = #tpu.dot_dimension_numbers<[1], [0], [0], [1], [0, 0, 1, 1], [], []>} : vector<8x8xf32>, vector<8x16xf32>, vector<8x16xf32> -> vector<8x16xf32>
      %c0_67 = arith.constant 0 : index
      %c0_68 = arith.constant 0 : index
      %83 = vector.load %arg14[%c0_67, %c0_68] : memref<8x80xf32, #tpu.memory_space<vmem>>, vector<8x16xf32>
      tpu.vector_store %arg14[%c0_67, %c0_68], %82 {strides = array<i32>} : memref<8x80xf32, #tpu.memory_space<vmem>>, vector<8x16xf32>,
      %c0_69 = arith.constant 0 : index
      %c1_70 = arith.constant 1 : index
      %c0_71 = arith.constant 0 : index
      %84 = vector.load %arg13[%c0_69, %c1_70, %c0_71] : memref<8x5x8xf32, #tpu.memory_space<vmem>>, vector<8x1x8xf32>
      %85 = vector.shape_cast %84 : vector<8x1x8xf32> to vector<8x8xf32>
      %cst_72 = arith.constant dense<0.000000e+00> : vector<8x16xf32>
      %86 = tpu.matmul %85, %79, %cst_72 {dimension_numbers = #tpu.dot_dimension_numbers<[1], [0], [0], [1], [0, 0, 1, 1], [], []>} : vector<8x8xf32>, vector<8x16xf32>, vector<8x16xf32> -> vector<8x16xf32>
      %c0_73 = arith.constant 0 : index
      %c16 = arith.constant 16 : index
      %87 = vector.load %arg14[%c0_73, %c16] : memref<8x80xf32, #tpu.memory_space<vmem>>, vector<8x16xf32>
      tpu.vector_store %arg14[%c0_73, %c16], %86 {strides = array<i32>} : memref<8x80xf32, #tpu.memory_space<vmem>>, vector<8x16xf32>,
      %c0_74 = arith.constant 0 : index
      %c2_75 = arith.constant 2 : index
      %c0_76 = arith.constant 0 : index
      %88 = vector.load %arg13[%c0_74, %c2_75, %c0_76] : memref<8x5x8xf32, #tpu.memory_space<vmem>>, vector<8x1x8xf32>
      %89 = vector.shape_cast %88 : vector<8x1x8xf32> to vector<8x8xf32>
      %cst_77 = arith.constant dense<0.000000e+00> : vector<8x16xf32>
      %90 = tpu.matmul %89, %79, %cst_77 {dimension_numbers = #tpu.dot_dimension_numbers<[1], [0], [0], [1], [0, 0, 1, 1], [], []>} : vector<8x8xf32>, vector<8x16xf32>, vector<8x16xf32> -> vector<8x16xf32>
      %c0_78 = arith.constant 0 : index
      %c32 = arith.constant 32 : index
      %91 = vector.load %arg14[%c0_78, %c32] : memref<8x80xf32, #tpu.memory_space<vmem>>, vector<8x16xf32>
      tpu.vector_store %arg14[%c0_78, %c32], %90 {strides = array<i32>} : memref<8x80xf32, #tpu.memory_space<vmem>>, vector<8x16xf32>,
      %c0_79 = arith.constant 0 : index
      %c3_80 = arith.constant 3 : index
      %c0_81 = arith.constant 0 : index
      %92 = vector.load %arg13[%c0_79, %c3_80, %c0_81] : memref<8x5x8xf32, #tpu.memory_space<vmem>>, vector<8x1x8xf32>
      %93 = vector.shape_cast %92 : vector<8x1x8xf32> to vector<8x8xf32>
      %cst_82 = arith.constant dense<0.000000e+00> : vector<8x16xf32>
      %94 = tpu.matmul %93, %79, %cst_82 {dimension_numbers = #tpu.dot_dimension_numbers<[1], [0], [0], [1], [0, 0, 1, 1], [], []>} : vector<8x8xf32>, vector<8x16xf32>, vector<8x16xf32> -> vector<8x16xf32>
      %c0_83 = arith.constant 0 : index
      %c48 = arith.constant 48 : index
      %95 = vector.load %arg14[%c0_83, %c48] : memref<8x80xf32, #tpu.memory_space<vmem>>, vector<8x16xf32>
      tpu.vector_store %arg14[%c0_83, %c48], %94 {strides = array<i32>} : memref<8x80xf32, #tpu.memory_space<vmem>>, vector<8x16xf32>,
      %c0_84 = arith.constant 0 : index
      %c4_85 = arith.constant 4 : index
      %c0_86 = arith.constant 0 : index
      %96 = vector.load %arg13[%c0_84, %c4_85, %c0_86] : memref<8x5x8xf32, #tpu.memory_space<vmem>>, vector<8x1x8xf32>
      %97 = vector.shape_cast %96 : vector<8x1x8xf32> to vector<8x8xf32>
      %cst_87 = arith.constant dense<0.000000e+00> : vector<8x16xf32>
      %98 = tpu.matmul %97, %79, %cst_87 {dimension_numbers = #tpu.dot_dimension_numbers<[1], [0], [0], [1], [0, 0, 1, 1], [], []>} : vector<8x8xf32>, vector<8x16xf32>, vector<8x16xf32> -> vector<8x16xf32>
      %c0_88 = arith.constant 0 : index
      %c64 = arith.constant 64 : index
      %99 = vector.load %arg14[%c0_88, %c64] : memref<8x80xf32, #tpu.memory_space<vmem>>, vector<8x16xf32>
      tpu.vector_store %arg14[%c0_88, %c64], %98 {strides = array<i32>} : memref<8x80xf32, #tpu.memory_space<vmem>>, vector<8x16xf32>,
    } else {
    }
    %c0 = arith.constant 0 : index
    %c0_1 = arith.constant 0 : index
    %3 = vector.load %arg10[%c0, %c0_1] : memref<8x8xf32, #tpu.memory_space<vmem>>, vector<8x8xf32>
    %c0_2 = arith.constant 0 : index
    %c0_3 = arith.constant 0 : index
    %4 = vector.load %arg14[%c0_2, %c0_3] : memref<8x80xf32, #tpu.memory_space<vmem>>, vector<8x80xf32>
    %cst = arith.constant dense<0.000000e+00> : vector<8x80xf32>
    %5 = tpu.matmul %3, %4, %cst {dimension_numbers = #tpu.dot_dimension_numbers<[1], [0], [0], [1], [0, 0, 1, 1], [], []>} : vector<8x8xf32>, vector<8x80xf32>, vector<8x80xf32> -> vector<8x80xf32>
    %6 = vector.extract_strided_slice %5 {offsets = [0, 0], sizes = [8, 16], strides = [1, 1]} : vector<8x80xf32> to vector<8x16xf32>
    %c0_4 = arith.constant 0 : index
    %c0_5 = arith.constant 0 : index
    %c0_6 = arith.constant 0 : index
    %c0_7 = arith.constant 0 : index
    %7 = vector.load %arg12[%c0_4, %c0_5, %c0_6, %c0_7] : memref<1x5x8x16xf32, #tpu.memory_space<vmem>>, vector<1x1x8x16xf32>
    %8 = vector.shape_cast %7 : vector<1x1x8x16xf32> to vector<8x16xf32>
    %9 = vector.shape_cast %6 : vector<8x16xf32> to vector<1x1x8x16xf32>
    tpu.vector_store %arg12[%c0_4, %c0_5, %c0_6, %c0_7], %9 {strides = array<i32>} : memref<1x5x8x16xf32, #tpu.memory_space<vmem>>, vector<1x1x8x16xf32>,
    %10 = vector.extract_strided_slice %5 {offsets = [0, 16], sizes = [8, 16], strides = [1, 1]} : vector<8x80xf32> to vector<8x16xf32>
    %c0_8 = arith.constant 0 : index
    %c1 = arith.constant 1 : index
    %c0_9 = arith.constant 0 : index
    %c0_10 = arith.constant 0 : index
    %11 = vector.load %arg12[%c0_8, %c1, %c0_9, %c0_10] : memref<1x5x8x16xf32, #tpu.memory_space<vmem>>, vector<1x1x8x16xf32>
    %12 = vector.shape_cast %11 : vector<1x1x8x16xf32> to vector<8x16xf32>
    %13 = vector.shape_cast %10 : vector<8x16xf32> to vector<1x1x8x16xf32>
    tpu.vector_store %arg12[%c0_8, %c1, %c0_9, %c0_10], %13 {strides = array<i32>} : memref<1x5x8x16xf32, #tpu.memory_space<vmem>>, vector<1x1x8x16xf32>,
    %14 = vector.extract_strided_slice %5 {offsets = [0, 32], sizes = [8, 16], strides = [1, 1]} : vector<8x80xf32> to vector<8x16xf32>
    %c0_11 = arith.constant 0 : index
    %c2 = arith.constant 2 : index
    %c0_12 = arith.constant 0 : index
    %c0_13 = arith.constant 0 : index
    %15 = vector.load %arg12[%c0_11, %c2, %c0_12, %c0_13] : memref<1x5x8x16xf32, #tpu.memory_space<vmem>>, vector<1x1x8x16xf32>
    %16 = vector.shape_cast %15 : vector<1x1x8x16xf32> to vector<8x16xf32>
    %17 = vector.shape_cast %14 : vector<8x16xf32> to vector<1x1x8x16xf32>
    tpu.vector_store %arg12[%c0_11, %c2, %c0_12, %c0_13], %17 {strides = array<i32>} : memref<1x5x8x16xf32, #tpu.memory_space<vmem>>, vector<1x1x8x16xf32>,
    %18 = vector.extract_strided_slice %5 {offsets = [0, 48], sizes = [8, 16], strides = [1, 1]} : vector<8x80xf32> to vector<8x16xf32>
    %c0_14 = arith.constant 0 : index
    %c3 = arith.constant 3 : index
    %c0_15 = arith.constant 0 : index
    %c0_16 = arith.constant 0 : index
    %19 = vector.load %arg12[%c0_14, %c3, %c0_15, %c0_16] : memref<1x5x8x16xf32, #tpu.memory_space<vmem>>, vector<1x1x8x16xf32>
    %20 = vector.shape_cast %19 : vector<1x1x8x16xf32> to vector<8x16xf32>
    %21 = vector.shape_cast %18 : vector<8x16xf32> to vector<1x1x8x16xf32>
    tpu.vector_store %arg12[%c0_14, %c3, %c0_15, %c0_16], %21 {strides = array<i32>} : memref<1x5x8x16xf32, #tpu.memory_space<vmem>>, vector<1x1x8x16xf32>,
    %22 = vector.extract_strided_slice %5 {offsets = [0, 64], sizes = [8, 16], strides = [1, 1]} : vector<8x80xf32> to vector<8x16xf32>
    %c0_17 = arith.constant 0 : index
    %c4 = arith.constant 4 : index
    %c0_18 = arith.constant 0 : index
    %c0_19 = arith.constant 0 : index
    %23 = vector.load %arg12[%c0_17, %c4, %c0_18, %c0_19] : memref<1x5x8x16xf32, #tpu.memory_space<vmem>>, vector<1x1x8x16xf32>
    %24 = vector.shape_cast %23 : vector<1x1x8x16xf32> to vector<8x16xf32>
    %25 = vector.shape_cast %22 : vector<8x16xf32> to vector<1x1x8x16xf32>
    tpu.vector_store %arg12[%c0_17, %c4, %c0_18, %c0_19], %25 {strides = array<i32>} : memref<1x5x8x16xf32, #tpu.memory_space<vmem>>, vector<1x1x8x16xf32>,
    return
  }
  func.func @transform_0(%arg0: i32, %arg1: i32, %arg2: i32) -> (i32, i32, i32) {
    %c0_i32 = arith.constant 0 : i32
    %c0_i32_0 = arith.constant 0 : i32
    %c0_i32_1 = arith.constant 0 : i32
    return %arg0, %c0_i32, %c0_i32_0 : i32, i32, i32
  }
  func.func @transform_1(%arg0: i32, %arg1: i32, %arg2: i32) -> (i32, i32) {
    %c0_i32 = arith.constant 0 : i32
    %c0_i32_0 = arith.constant 0 : i32
    %c0_i32_1 = arith.constant 0 : i32
    return %c0_i32, %c0_i32_0 : i32, i32
  }
  func.func @transform_2(%arg0: i32, %arg1: i32, %arg2: i32) -> (i32, i32) {
    %c0_i32 = arith.constant 0 : i32
    %c0_i32_0 = arith.constant 0 : i32
    %c0_i32_1 = arith.constant 0 : i32
    return %c0_i32, %c0_i32_0 : i32, i32
  }
  func.func @transform_3(%arg0: i32, %arg1: i32, %arg2: i32) -> (i32, i32) {
    %c0_i32 = arith.constant 0 : i32
    %c0_i32_0 = arith.constant 0 : i32
    %c0_i32_1 = arith.constant 0 : i32
    return %c0_i32, %c0_i32_0 : i32, i32
  }
  func.func @transform_4(%arg0: i32, %arg1: i32, %arg2: i32) -> (i32, i32) {
    %c0_i32 = arith.constant 0 : i32
    %c0_i32_0 = arith.constant 0 : i32
    %c0_i32_1 = arith.constant 0 : i32
    return %c0_i32, %c0_i32_0 : i32, i32
  }
  func.func @transform_5(%arg0: i32, %arg1: i32, %arg2: i32) -> (i32, i32) {
    %c0_i32 = arith.constant 0 : i32
    %c0_i32_0 = arith.constant 0 : i32
    %c0_i32_1 = arith.constant 0 : i32
    return %c0_i32, %c0_i32_0 : i32, i32
  }
  func.func @transform_6(%arg0: i32, %arg1: i32, %arg2: i32) -> (i32, i32) {
    %c0_i32 = arith.constant 0 : i32
    %c0_i32_0 = arith.constant 0 : i32
    %c0_i32_1 = arith.constant 0 : i32
    return %c0_i32, %c0_i32_0 : i32, i32
  }
  func.func @transform_7(%arg0: i32, %arg1: i32, %arg2: i32) -> (i32, i32) {
    %c2_i32 = arith.constant 2 : i32
    %0 = arith.muli %arg1, %c2_i32 : i32
    %1 = arith.addi %0, %arg2 : i32
    %c0_i32 = arith.constant 0 : i32
    %c0_i32_0 = arith.constant 0 : i32
    return %1, %c0_i32 : i32, i32
  }
  func.func @transform_8(%arg0: i32, %arg1: i32, %arg2: i32) -> (i32, i32) {
    %c0_i32 = arith.constant 0 : i32
    %c0_i32_0 = arith.constant 0 : i32
    %c0_i32_1 = arith.constant 0 : i32
    return %c0_i32, %c0_i32_0 : i32, i32
  }
  func.func @transform_9(%arg0: i32, %arg1: i32, %arg2: i32) -> (i32, i32, i32, i32) {
    %c2_i32 = arith.constant 2 : i32
    %0 = arith.muli %arg1, %c2_i32 : i32
    %1 = arith.addi %0, %arg2 : i32
    %c0_i32 = arith.constant 0 : i32
    %c0_i32_0 = arith.constant 0 : i32
    %c0_i32_1 = arith.constant 0 : i32
    return %arg0, %c0_i32, %1, %c0_i32_0 : i32, i32, i32, i32
  }
}

</mosaic_0001>

<bundles_post_ra>
// kernel: incremental_seg_forward.1
= control target key start
LH: loop header
LB: loop body
LE: loop exit
PB: predicated region body
PF: predicated region fallthrough
CT: control target
= control target key end

     0   :  { %14 = vsyncpa [#allocation5], 0  ;;  %s1624_s0 = inlined_call_operand.vmem [shape: f32[2,4,64], index: 0, kind: input, shape index: {}]   ;;  %s1625_s1 = inlined_call_operand.vmem [shape: f32[32,4], index: 1, kind: input, shape index: {}]   ;;  %s1626_s2 = inlined_call_operand.vmem [shape: f32[32,1], index: 2, kind: input, shape index: {}]   ;;  %s1627_s3 = inlined_call_operand.vmem [shape: f32[32,32], index: 3, kind: input, shape index: {}]   ;;  %s1628_s4 = inlined_call_operand.vmem [shape: f32[32,1], index: 4, kind: input, shape index: {}]   ;;  %s1629_s5 = inlined_call_operand.vmem [shape: f32[5,32], index: 5, kind: input, shape index: {}]   ;;  %s1630_s6 = inlined_call_operand.vmem [shape: f32[5,1], index: 6, kind: input, shape index: {}]   ;;  %s1631_s7 = inlined_call_operand.vmem [shape: f32[16,8], index: 7, kind: input, shape index: {}]   ;;  %s1632_s8 = inlined_call_operand.vmem [shape: f32[8,16], index: 8, kind: input, shape index: {}]   ;;  %s1633_s9 = inlined_call_operand.hbm [shape: f32[2,5,16,16], index: 9, kind: output, shape index: {}]  }
   0x1   :  { %16 = vsyncpa [#allocation5 + $0x1], 0  ;;  %s1357_s30 = smov 0   ;;  %s1359_s10 = smov 0  }
   0x2   :  { %s1361_s11 = smov 0   ;;  %s1363_s12 = smov 0  }
   0x3   :  { %s1365_s13 = smov 0   ;;  %s1367_s14 = smov 0  }
   0x4   :  { %s1369_s15 = smov 0   ;;  %s1371_s16 = smov 0  }
   0x5 LB: > { %1639 = sst [smem:[#allocation7_spill]] %s1278_s14  ;;  %s1066_s17 = sadd.s32 4294967295, %s1286_s16   ;;  %s1286_s16 = sphi %s1371_s16, %s22_s16   ;;  %s1282_s15 = sphi %s1369_s15, %s1651_s15   ;;  %s1278_s14 = sphi %s1367_s14, %s1650_s14   ;;  %s1274_s13 = sphi %s1365_s13, %s1649_s13   ;;  %s1270_s12 = sphi %s1363_s12, %s1648_s12   ;;  %s1266_s11 = sphi %s1361_s11, %s1654_s11   ;;  %s1262_s10 = sphi %s1359_s10, %s1653_s10   ;;  %s1258_s30 = sphi %s1357_s30, %s1652_s30  }
   0x6   : > { %1640 = sst [smem:[#allocation8_spill]] %s1282_s15  ;;  %s1067_s18 = sadd.s32 4294967294, %s1286_s16  }
   0x7   : > { %s34_s19 = sadd.s32 1, %s1278_s14  ;;  %s41_s20 = sadd.s32 1, %s1282_s15 }
   0x8   : > { %p35_p0 = scmp.ge.s32.totalorder %s34_s19, 2  ;;  %p267_p1 = scmp.ne.s32.totalorder %s1266_s11, %s1262_s10 }
   0x9   : > { %p268_p2 = scmp.eq.s32.totalorder %s1066_s17, 3  ;;  %p273_p5 = scmp.ne.s32.totalorder %s1262_s10, %s1258_s30 }
   0xa   : > { %s1656_s19 = smov (%p35_p0, %s34_s19), 0  ;;  %s1658_s20 = smov (!%p35_p0, %s41_s20), %s1282_s15 }
   0xb   : > { %1641 = sst [smem:[#allocation9_spill]] %s1656_s19  ;;  %s253_s21 = ssub.s32 %s1278_s14, %s1656_s19 }
   0xc   : > { %p1408_p3 = por %p268_p2, %p267_p1  ;;  %p43_p4 = scmp.ge.s32.totalorder %s1658_s20, 2 }
   0xd   : > { %p274_p6 = scmp.eq.s32.totalorder %s1067_s18, 3  ;;  %p1070_p7 = scmp.ge.s32.totalorder %s1286_s16, 1 }
   0xe   : > { %s1660_s20 = smov (%p43_p4, %s1658_s20), 0  ;;  %p331_p9 = scmp.lt.s32.totalorder %s1286_s16, 5 }
   0xf   : > { %1643 = sst [smem:[#allocation10_spill]] %s1660_s20  ;;  %p1417_p8 = por %p274_p6, %p273_p5 }
  0x10   : > { %s252_s24 = ssub.s32 %s1282_s15, %s1660_s20  ;;  %s257_s25 = sadd.s32 1, %s1266_s11 }
  0x11   : > { %s254_s26 = sor.u32 %s253_s21, %s252_s24  ;;  %p332_p10 = pnand %p1070_p7, %p331_p9 }
  0x12   : > { %p255_p11 = scmp.eq.s32.totalorder %s254_s26, 0  ;;  %s1638_s28 = sand.u32 (!%p332_p10), 1, %s1262_s10  }
  0x13   : > { %335 = sbr.rel (%p332_p10) target bundleno = 1160 (0x488), region = 56  ;;  %p372_p12 = scmp.lt.s32.totalorder (!%p332_p10), %s1274_s13, 1 }
  0x14   : > { %s1426_s27 = scalar_select %p255_p11, %s1266_s11, %s257_s25  }
  0x15   : > { %s1097_s29 = smul.u32 (!%p332_p10), 40, %s1638_s28  ;;  %p378_p13 = scmp.lt.s32.totalorder (!%p332_p10), %s1270_s12, 1 }
  0x16   : > { %1645 = sst [smem:[#allocation11_spill]] %s1426_s27  ;;  %p1073_p0 = scmp.ne.s32.totalorder (!%p332_p10), %s1270_s12, 0 }
  0x17   : > { %s1443_s27 = scalar_lea.vmem (!%p332_p10), [#allocation4], %s1097_s29 }
  0x18   : > { %s373_s17 = scalar_select %p372_p12, %s1274_s13, 1 }
  0x19   : > { %s379_s25 = scalar_select %p378_p13, %s1270_s12, 1 }
  0x1a   : > { %s1071_s18 = sshll.u32 %s373_s17, 2  ;;  %389 = sbr.rel (%p1073_p0) target bundleno = 897 (0x381), region = 60 }
  0x1b   : > { %s375_s24 = scalar_lea.vmem %s1624_s0, %s1071_s18  ;;  %s1072_s26 = sshll.u32 %s379_s25, 3 }
  0x1c   : > { %s1441_s14 = scalar_lea.vmem %s1631_s7, %s1072_s26  ;;  %s1289_s18 = smov (!%p1073_p0), 104  }
  0x1d   : > { %s1290_s15 = smov (!%p1073_p0), 112   ;;  %s1291_s19 = smov (!%p1073_p0), 120  }
  0x1e   : > { %s1292_s28 = smov (!%p1073_p0), 80   ;;  %s1293_s29 = smov (!%p1073_p0), 88  }
  0x1f   : > { %v390_v0 = vld [vmem:[%s375_s24] sm:$0xf]  ;;  %vm432_vm0 = vcmask 1043456   ;;  %vm419_vm1 = vcmask 31744   ;;  %v1288_v2 = vmov 0   ;;  %v396_v3 = vld [vmem:[%s1626_s2 + $0x8] sm:$0xff] }
  0x20   : > { %v391_v1 = vld [vmem:[%s1625_s1] sm:$0xff]  ;;  %1074 = vmatpush.msk.msra.mxu0 %vm432_vm0, %v390_v0  ;;  %1190 = vset.pattern.permute.xlu1 %v1288_v2  ;;  %v398_v4 = vld [vmem:[%s1626_s2 + $0x18] sm:$0xff]  ;;  %v392_v5 = vld [vmem:[%s1625_s1 + $0x8] sm:$0xff]  ;;  %vm497_vm2 = vcmask 261120   ;;  %vm573_vm3 = vcmask 61440   ;;  %s1294_s21 = smov 96  }
  0x21   : > { %1075 = vmatmul.msk.f32.vlgmr.msra.gmra.mxu0 %vm419_vm1, %v391_v1  ;;  %406 = vperm.xlu1 %1190, %v396_v3   ;;  %v395_v6 = vld [vmem:[%s1626_s2] sm:$0xff]  ;;  %v397_v7 = vld [vmem:[%s1626_s2 + $0x10] sm:$0xff]  ;;  %v474_v10 = vld [vmem:[%s1628_s4 + $0x8] sm:$0xff]  ;;  %s1295_s24 = smov 72   ;;  %vm629_vm4 = vcmask 1041409   ;;  %vm632_vm5 = vcmask 1042434  }
  0x22   : > { %1189 = vset.pattern.permute.xlu0 %v1288_v2  ;;  %1191 = vset.pattern.permute.xlu2 %v1288_v2  ;;  %v393_v8 = vld [vmem:[%s1625_s1 + $0x10] sm:$0xff]  ;;  %v473_v9 = vld [vmem:[%s1628_s4] sm:$0xff]  ;;  %v394_v11 = vld [vmem:[%s1625_s1 + $0x18] sm:$0xff]  ;;  %vm635_vm6 = vcmask 1043459   ;;  %vm638_vm7 = vcmask 1044484   ;;  %vm641_vm8 = vcmask 1045509  }
  0x23   : > { %416 = vperm.xlu0 %1189, %v398_v4   ;;  %v476_v24 = vld [vmem:[%s1628_s4 + $0x18] sm:$0xff]  ;;  %v469_v29 = vld [vmem:[%s1627_s3] sm:$0xff]  ;;  %v475_v30 = vld [vmem:[%s1628_s4 + $0x10] sm:$0xff]  ;;  %vm644_vm9 = vcmask 1046534   ;;  %vm647_vm10 = vcmask 1047559   ;;  %vm649_vm11 = vcmask 64512  }
  0x24   : > { %494 = vperm.xlu2 %1191, %v476_v24   ;;  %v470_v31 = vld [vmem:[%s1627_s3 + $0x8] sm:$0xff]  ;;  %v544_v32 = vld [vmem:[%s1630_s6] sm:$0x1f]  ;;  %v471_v33 = vld [vmem:[%s1627_s3 + $0x10] sm:$0xff]  ;;  %vm672_vm12 = vcmask 130048   ;;  %s1296_s17 = smov 32  }
  0x25   : > { %v472_v34 = vld [vmem:[%s1627_s3 + $0x18] sm:$0xff]  ;;  %v543_v51 = vld [vmem:[%s1629_s5] sm:$0x1f]  ;;  %s1297_s20 = smov 16   ;;  %vm730_vm13 = vcmask 261248   ;;  %vm788_vm14 = vcmask 392448  }
  0x26   : > { %v1515_v57 = vld [vmem:[%s1632_s8] sm:$0xff]  ;;  %vm846_vm15 = vcmask 523648   ;;  %vm904_vm0 = vcmask 654848  }
  0x27   : > { %667 = vmatpush.msra.mxu3 %v1515_v57 }
  0x29   : > { %1076 = vmatmul.msk.f32.gmra.mxu0 %vm419_vm1, %v392_v5  ;;  %401 = vperm.xlu1 %1190, %v395_v6  }
  0x2a   : > { %721 = vmatpush.msrb.mxu3 %v1515_v57 }
  0x2b   : > { %411 = vperm.xlu0 %1189, %v397_v7  }
  0x2c   : > { %489 = vperm.xlu2 %1191, %v475_v30  }
  0x31   : > { %1077 = vmatmul.msk.f32.gmra.mxu0 %vm419_vm1, %v393_v8  ;;  %479 = vperm.xlu1 %1190, %v473_v9  }
  0x33   : > { %484 = vperm.xlu0 %1189, %v474_v10  }
  0x34   : > { %547 = vperm.xlu2 %1191, %v544_v32  }
  0x39   : > { %1078 = vmatmul.msk.f32.gmra.mxu0 %vm419_vm1, %v394_v11 }
  0x7e   : > { %v495_v37 = vpop.permute.xlu2 %494 }
  0x86   : > { %v490_v39 = vpop.permute.xlu2 %489 }
  0x8e   : > { %v548_v52 = vpop.permute.xlu2 %547 }
  0x93   : > { %v407_v15 = vpop.permute.xlu1 %406 }
  0x95   : > { %v417_v14 = vpop.permute.xlu0 %416 }
  0x9b   : > { %v402_v21 = vpop.permute.xlu1 %401 }
  0x9d   : > { %v412_v17 = vpop.permute.xlu0 %411 }
  0x9e   : > { %v453_v12 = vpop.f32.mrf.mxu0 }
  0x9f   : > { %v454_v25 = vadd.f32 %v453_v12, %v402_v21 }
  0xa1   : > { %v465_v28 = vmax.f32 %v454_v25, 0.0 }
  0xa3   : > { %v480_v46 = vpop.permute.xlu1 %479 }
  0xa5   : > { %v485_v43 = vpop.permute.xlu0 %484 }
  0xa6   : > { %v456_v13 = vpop.f32.mrf.mxu0 }
  0xa7   : > { %v457_v22 = vadd.f32 %v456_v13, %v407_v15 }
  0xa9   : > { %v466_v27 = vmax.f32 %v457_v22, 0.0 }
  0xae   : > { %v459_v16 = vpop.f32.mrf.mxu0 }
  0xaf   : > { %v460_v19 = vadd.f32 %v459_v16, %v412_v17 }
  0xb1   : > { %v467_v26 = vmax.f32 %v460_v19, 0.0 }
  0xb6   : > { %v462_v18 = vpop.f32.mrf.mxu0 }
  0xb7   : > { %v463_v20 = vadd.f32 %v462_v18, %v417_v14 }
  0xb9   : > { %v468_v23 = vmax.f32 %v463_v20, 0.0 }
  0xbb   : > { %522 = vmatpush.msra.mxu1 %v468_v23 }
  0xbd   : > { %523 = vmatpush.msra.mxu1 %v467_v26 }
  0xbf   : > { %524 = vmatpush.msra.mxu1 %v466_v27 }
  0xc1   : > { %525 = vmatpush.msra.mxu1 %v465_v28 }
  0xc2   : > { %1079 = vmatmul.msk.f32.vlgmr.msra.gmra.mxu1 %vm497_vm2, %v469_v29 }
  0xca   : > { %1080 = vmatmul.msk.f32.gmra.mxu1 %vm497_vm2, %v470_v31 }
  0xd2   : > { %1081 = vmatmul.msk.f32.gmra.mxu1 %vm497_vm2, %v471_v33 }
  0xda   : > { %1082 = vmatmul.msk.f32.gmra.mxu1 %vm497_vm2, %v472_v34 }
 0x13f   : > { %v527_v35 = vpop.f32.mrf.mxu1 }
 0x140   : > { %v528_v47 = vadd.f32 %v527_v35, %v480_v46 }
 0x142   : > { %v539_v50 = vmax.f32 %v528_v47, 0.0 }
 0x147   : > { %v530_v36 = vpop.f32.mrf.mxu1 }
 0x148   : > { %v531_v44 = vadd.f32 %v530_v36, %v485_v43 }
 0x14a   : > { %v540_v49 = vmax.f32 %v531_v44, 0.0 }
 0x14f   : > { %v533_v38 = vpop.f32.mrf.mxu1 }
 0x150   : > { %v534_v41 = vadd.f32 %v533_v38, %v490_v39 }
 0x152   : > { %v541_v48 = vmax.f32 %v534_v41, 0.0 }
 0x157   : > { %v536_v40 = vpop.f32.mrf.mxu1 }
 0x158   : > { %v537_v42 = vadd.f32 %v536_v40, %v495_v37 }
 0x15a   : > { %v542_v45 = vmax.f32 %v537_v42, 0.0 }
 0x15c   : > { %565 = vmatpush.msra.mxu2 %v542_v45 }
 0x15e   : > { %566 = vmatpush.msra.mxu2 %v541_v48 }
 0x160   : > { %567 = vmatpush.msra.mxu2 %v540_v49 }
 0x162   : > { %568 = vmatpush.msra.mxu2 %v539_v50 }
 0x163   : > { %1083 = vmatmul.msk.f32.vlgmr.msra.gmra.mxu2 %vm497_vm2, %v543_v51 }
 0x164   : > { %779 = vmatpush.msrb.mxu2 %v1515_v57 }
 0x166   : > { %895 = vmatpush.msra.mxu2 %v1515_v57 }
 0x1e6   : > { %v570_v53 = vpop.f32.mrf.mxu2 }
 0x1e7   : > { %v571_v54 = vadd.f32 %v570_v53, %v548_v52 }
 0x1e9   : > { %586 = vrot.lane.b32.xlu2 %v571_v54, %s1289_s18  ;;  %581 = vrot.lane.b32.xlu1 %v571_v54, %s1290_s15  ;;  %574 = vst.msk [vmem:[#allocation2] sm:$0x1f] %vm573_vm3, %v571_v54  ;;  %s1298_s18 = smov 64   ;;  %s1299_s15 = smov 48  }
 0x1ea   : > { %576 = vrot.lane.b32.xlu0 %v571_v54, %s1291_s19 }
 0x1f0   : > { %v612_v4 = vld [vmem:[#allocation2] sm:$0x1]  ;;  %v732_v6 = vld [vmem:[#allocation2 + $0x2] sm:$0x1]  ;;  %v674_v30 = vld [vmem:[#allocation2 + $0x1] sm:$0x1] }
 0x1f1   : > { %601 = vrot.lane.b32.xlu2 %v571_v54, %s1292_s28  ;;  %596 = vrot.lane.b32.xlu1 %v571_v54, %s1293_s29  ;;  %v848_v31 = vld [vmem:[#allocation2 + $0x4] sm:$0x1] }
 0x1f2   : > { %591 = vrot.lane.b32.xlu0 %v571_v54, %s1294_s21 }
 0x1fa   : > { %606 = vrot.lane.b32.xlu0 %v571_v54, %s1295_s24 }
 0x243   : > { %v587_v55 = vpop.permute.xlu2 %586 }
 0x244   : > { %590 = vst.msk [vmem:[#allocation2 + $0x18] sm:$0x1f] %vm573_vm3, %v587_v55 }
 0x24b   : > { %v602_v56 = vpop.permute.xlu2 %601  ;;  %v615_v5 = vld [vmem:[#allocation2 + $0x18] sm:$0x1]  ;;  %v735_v14 = vld [vmem:[#allocation2 + $0x1a] sm:$0x1]  ;;  %v677_v26 = vld [vmem:[#allocation2 + $0x19] sm:$0x1] }
 0x24c   : > { %605 = vst.msk [vmem:[#allocation2 + $0x30] sm:$0x1f] %vm573_vm3, %v602_v56  ;;  %v634_v13 = vrot.slane %v615_v5, 5  ;;  %v752_v28 = vrot.slane %v735_v14, 5  ;;  %v851_v33 = vld [vmem:[#allocation2 + $0x1c] sm:$0x1] }
 0x24d   : > { %v694_v46 = vrot.slane %v677_v26, 5  ;;  %v868_v48 = vrot.slane %v851_v33, 5 }
 0x253   : > { %v618_v35 = vld [vmem:[#allocation2 + $0x30] sm:$0x1]  ;;  %v738_v38 = vld [vmem:[#allocation2 + $0x32] sm:$0x1] }
 0x254   : > { %v643_v49 = vrot.slane %v618_v35, 2  ;;  %v758_v50 = vrot.slane %v738_v38, 2 }
 0x25b   : > { %v582_v58 = vpop.permute.xlu1 %581 }
 0x25c   : > { %585 = vst.msk [vmem:[#allocation2 + $0x10] sm:$0x1f] %vm573_vm3, %v582_v58  ;;  %v577_v59 = vpop.permute.xlu0 %576 }
 0x25d   : > { %580 = vst.msk [vmem:[#allocation2 + $0x8] sm:$0x1f] %vm573_vm3, %v577_v59 }
 0x263   : > { %v597_v60 = vpop.permute.xlu1 %596  ;;  %v614_v61 = vld [vmem:[#allocation2 + $0x10] sm:$0x1]  ;;  %v734_v0 = vld [vmem:[#allocation2 + $0x12] sm:$0x1]  ;;  %v676_v15 = vld [vmem:[#allocation2 + $0x11] sm:$0x1] }
 0x264   : > { %600 = vst.msk [vmem:[#allocation2 + $0x28] sm:$0x1f] %vm573_vm3, %v597_v60  ;;  %v592_v62 = vpop.permute.xlu0 %591  ;;  %v613_v63 = vld [vmem:[#allocation2 + $0x8] sm:$0x1]  ;;  %v733_v2 = vld [vmem:[#allocation2 + $0xa] sm:$0x1] }
 0x265   : > { %595 = vst.msk [vmem:[#allocation2 + $0x20] sm:$0x1f] %vm573_vm3, %v592_v62  ;;  %v628_v1 = vrot.slane %v613_v63, 7  ;;  %v748_v3 = vrot.slane %v733_v2, 7  ;;  %v631_v7 = vrot.slane %v614_v61, 6  ;;  %v750_v8 = vrot.slane %v734_v0, 6 }
 0x266   : > { %v675_v9 = vld [vmem:[#allocation2 + $0x9] sm:$0x1]  ;;  %v849_v10 = vld [vmem:[#allocation2 + $0xc] sm:$0x1]  ;;  %v850_v18 = vld [vmem:[#allocation2 + $0x14] sm:$0x1] }
 0x267   : > { %v630_v11 = vsel %vm629_vm4, %v628_v1, %v612_v4  ;;  %v749_v12 = vsel %vm629_vm4, %v748_v3, %v732_v6  ;;  %v690_v17 = vrot.slane %v675_v9, 7  ;;  %v864_v19 = vrot.slane %v849_v10, 7  ;;  %v791_v51 = vld [vmem:[#allocation2 + $0xb] sm:$0x1]  ;;  %v792_v1 = vld [vmem:[#allocation2 + $0x13] sm:$0x1] }
 0x268   : > { %v633_v22 = vsel %vm632_vm5, %v631_v7, %v630_v11  ;;  %v751_v25 = vsel %vm632_vm5, %v750_v8, %v749_v12  ;;  %v692_v32 = vrot.slane %v676_v15, 6  ;;  %v866_v34 = vrot.slane %v850_v18, 6  ;;  %v790_v11 = vld [vmem:[#allocation2 + $0x3] sm:$0x1]  ;;  %v854_v18 = vld [vmem:[#allocation2 + $0x34] sm:$0x1] }
 0x269   : > { %v636_v36 = vsel %vm635_vm6, %v634_v13, %v633_v22  ;;  %v753_v39 = vsel %vm635_vm6, %v752_v28, %v751_v25  ;;  %v691_v43 = vsel %vm629_vm4, %v690_v17, %v674_v30  ;;  %v865_v44 = vsel %vm629_vm4, %v864_v19, %v848_v31  ;;  %v680_v17 = vld [vmem:[#allocation2 + $0x31] sm:$0x1] }
 0x26a   : > { %v693_v55 = vsel %vm632_vm5, %v692_v32, %v691_v43  ;;  %v867_v58 = vsel %vm632_vm5, %v866_v34, %v865_v44  ;;  %v806_v2 = vrot.slane %v791_v51, 7  ;;  %v700_v26 = vrot.slane %v680_v17, 2 }
 0x26b   : > { %v617_v16 = vld [vmem:[#allocation2 + $0x28] sm:$0x1]  ;;  %v737_v24 = vld [vmem:[#allocation2 + $0x2a] sm:$0x1]  ;;  %v679_v54 = vld [vmem:[#allocation2 + $0x29] sm:$0x1]  ;;  %v695_v5 = vsel %vm635_vm6, %v694_v46, %v693_v55  ;;  %v869_v6 = vsel %vm635_vm6, %v868_v48, %v867_v58 }
 0x26c   : > { %v607_v20 = vpop.permute.xlu0 %606  ;;  %v616_v21 = vld [vmem:[#allocation2 + $0x20] sm:$0x1]  ;;  %v736_v23 = vld [vmem:[#allocation2 + $0x22] sm:$0x1]  ;;  %v640_v37 = vrot.slane %v617_v16, 3  ;;  %v756_v40 = vrot.slane %v737_v24, 3 }
 0x26d   : > { %610 = vst.msk [vmem:[#allocation2 + $0x38] sm:$0x1f] %vm573_vm3, %v607_v20  ;;  %v637_v27 = vrot.slane %v616_v21, 4  ;;  %v754_v29 = vrot.slane %v736_v23, 4  ;;  %v678_v45 = vld [vmem:[#allocation2 + $0x21] sm:$0x1]  ;;  %v807_v20 = vsel %vm629_vm4, %v806_v2, %v790_v11 }
 0x26e   : > { %v852_v47 = vld [vmem:[#allocation2 + $0x24] sm:$0x1]  ;;  %v853_v56 = vld [vmem:[#allocation2 + $0x2c] sm:$0x1]  ;;  %v696_v61 = vrot.slane %v678_v45, 4  ;;  %v698_v9 = vrot.slane %v679_v54, 3 }
 0x26f   : > { %v639_v41 = vsel %vm638_vm7, %v637_v27, %v636_v36  ;;  %v755_v42 = vsel %vm638_vm7, %v754_v29, %v753_v39  ;;  %v870_v62 = vrot.slane %v852_v47, 4  ;;  %v872_v10 = vrot.slane %v853_v56, 3  ;;  %v794_v19 = vld [vmem:[#allocation2 + $0x23] sm:$0x1]  ;;  %v793_v21 = vld [vmem:[#allocation2 + $0x1b] sm:$0x1] }
 0x270   : > { %v642_v52 = vsel %vm641_vm8, %v640_v37, %v639_v41  ;;  %v757_v53 = vsel %vm641_vm8, %v756_v40, %v755_v42  ;;  %v697_v13 = vsel %vm638_vm7, %v696_v61, %v695_v5  ;;  %v808_v16 = vrot.slane %v792_v1, 6  ;;  %v795_v28 = vld [vmem:[#allocation2 + $0x2b] sm:$0x1]  ;;  %v796_v39 = vld [vmem:[#allocation2 + $0x33] sm:$0x1] }
 0x271   : > { %v645_v3 = vsel %vm644_vm9, %v643_v49, %v642_v52  ;;  %v759_v4 = vsel %vm644_vm9, %v758_v50, %v757_v53  ;;  %v871_v15 = vsel %vm638_vm7, %v870_v62, %v869_v6  ;;  %v699_v22 = vsel %vm641_vm8, %v698_v9, %v697_v13 }
 0x272   : > { %v873_v24 = vsel %vm641_vm8, %v872_v10, %v871_v15  ;;  %v874_v27 = vrot.slane %v854_v18, 2  ;;  %v809_v29 = vsel %vm632_vm5, %v808_v16, %v807_v20  ;;  %v812_v30 = vrot.slane %v794_v19, 4 }
 0x273   : > { %v810_v31 = vrot.slane %v793_v21, 5  ;;  %v814_v36 = vrot.slane %v795_v28, 3  ;;  %v816_v42 = vrot.slane %v796_v39, 2 }
 0x274   : > { %v619_v59 = vld [vmem:[#allocation2 + $0x38] sm:$0x1]  ;;  %v739_v60 = vld [vmem:[#allocation2 + $0x3a] sm:$0x1]  ;;  %v681_v12 = vld [vmem:[#allocation2 + $0x39] sm:$0x1]  ;;  %v875_v32 = vsel %vm644_vm9, %v874_v27, %v873_v24 }
 0x275   : > { %v646_v63 = vrot.slane %v619_v59, 1  ;;  %v760_v0 = vrot.slane %v739_v60, 1  ;;  %v855_v14 = vld [vmem:[#allocation2 + $0x3c] sm:$0x1]  ;;  %v702_v23 = vrot.slane %v681_v12, 1  ;;  %v811_v35 = vsel %vm635_vm6, %v810_v31, %v809_v29 }
 0x276   : > { %v876_v25 = vrot.slane %v855_v14, 1  ;;  %v797_v37 = vld [vmem:[#allocation2 + $0x3b] sm:$0x1]  ;;  %v813_v38 = vsel %vm638_vm7, %v812_v30, %v811_v35 }
 0x277   : > { %v648_v7 = vsel %vm647_vm10, %v646_v63, %v645_v3  ;;  %v761_v8 = vsel %vm647_vm10, %v760_v0, %v759_v4  ;;  %v815_v40 = vsel %vm641_vm8, %v814_v36, %v813_v38  ;;  %v818_v41 = vrot.slane %v797_v37, 1 }
 0x278   : > { %1084 = vmatmul.msk.f32.vlgmr.msra.gmra.mxu3 %vm649_vm11, %v648_v7  ;;  %1086 = vmatmul.msk.f32.vlgmr.msrb.gmra.mxu2 %vm649_vm11, %v761_v8  ;;  %v877_v34 = vsel %vm647_vm10, %v876_v25, %v875_v32  ;;  %v817_v43 = vsel %vm644_vm9, %v816_v42, %v815_v40 }
 0x279   : > { %837 = vmatpush.msra.mxu3 %v1515_v57  ;;  %v701_v57 = vsel %vm644_vm9, %v700_v26, %v699_v22  ;;  %v819_v44 = vsel %vm647_vm10, %v818_v41, %v817_v43 }
 0x27a   : > { %v703_v33 = vsel %vm647_vm10, %v702_v23, %v701_v57 }
 0x280   : > { %1085 = vmatmul.msk.f32.vlgmr.msrb.gmra.mxu3 %vm649_vm11, %v703_v33  ;;  %1088 = vmatmul.msk.f32.vlgmr.msra.gmra.mxu2 %vm649_vm11, %v877_v34 }
 0x288   : > { %1087 = vmatmul.msk.f32.vlgmr.msra.gmra.mxu3 %vm649_vm11, %v819_v44 }
 0x2fb   : > { %v669_v45 = vpop.f32.mrf.mxu3  ;;  %v781_v46 = vpop.f32.mrf.mxu2 }
 0x2fc   : > { %673 = vst.msk [vmem:[#allocation3] sm:$0xff] %vm672_vm12, %v669_v45  ;;  %785 = vrot.lane.b32.xlu2 %v781_v46, %s1296_s17 }
 0x303   : > { %v723_v47 = vpop.f32.mrf.mxu3  ;;  %v897_v48 = vpop.f32.mrf.mxu2 }
 0x304   : > { %727 = vrot.lane.b32.xlu1 %v723_v47, %s1297_s20 }
 0x30b   : > { %v839_v49 = vpop.f32.mrf.mxu3 }
 0x30c   : > { %901 = vrot.lane.b32.xlu1 %v897_v48, %s1298_s18  ;;  %843 = vrot.lane.b32.xlu0 %v839_v49, %s1299_s15 }
 0x356   : > { %v786_v51 = vpop.permute.xlu2 %785 }
 0x376   : > { %v728_v50 = vpop.permute.xlu1 %727 }
 0x377   : > { %731 = vst.msk [vmem:[#allocation3] sm:$0xff] %vm730_vm13, %v728_v50 }
 0x378   : > { %789 = vst.msk [vmem:[#allocation3] sm:$0xff] %vm788_vm14, %v786_v51 }
 0x37e   : > { %v902_v52 = vpop.permute.xlu1 %901  ;;  %v844_v53 = vpop.permute.xlu0 %843 }
 0x37f   : > { %847 = vst.msk [vmem:[#allocation3] sm:$0xff] %vm846_vm15, %v844_v53 }
 0x380   : > { %905 = vst.msk [vmem:[#allocation3] sm:$0xff] %vm904_vm0, %v902_v52 }
 0x381 PF: > { %v906_v55 = vld [vmem:[%s1441_s14] sm:$0xff]  ;;  %vm908_vm1 = vcmask 64512   ;;  %vm932_vm2 = vcmask 130048   ;;  %s1300_s19 = smov 80   ;;  %s1301_s28 = smov 112  }
 0x382   : > { %s1302_s29 = smov 64   ;;  %s1303_s21 = smov 96  }
 0x383   : > { %s1098_s14 = smul.u32 10, %s1274_s13  ;;  %s971_s18 = sshll.u32 %s1443_s27, 4  ;;  %s972_s18 = int_to_ptr.vmem [resolvable:$true] %s971_s18 }
 0x385   : > { %s968_s24 = sadd.s32 %s1270_s12, %s1098_s14  ;;  %s1646_s12 = sand.u32 1, %s1262_s10  }
 0x386   : > { %s1094_s25 = sshll.u32 %s968_s24, 3  ;;  %s956_s13 = scalar_lea.sflag [#allocation5], %s1646_s12 }
 0x387   : > { %v907_v54 = vld [vmem:[#allocation3] sm:$0xff]  ;;  %s970_s20 = scalar_lea.hbm %s1633_s9, %s1094_s25  ;;  %s1212_s14 = scalar_lea.hbm %s1633_s9, 160 }
 0x388   : > { %927 = vmatpush.msra.mxu0 %v907_v54  ;;  %s973_s15 = sshll.u32 %s970_s20, 4  ;;  %s974_s15 = int_to_ptr.hbm [resolvable:$true] %s973_s15 }
 0x389   : > { %1089 = vmatmul.msk.f32.vlgmr.msra.gmra.mxu0 %vm908_vm1, %v906_v55 }
 0x406   : > { %v929_v56 = vpop.f32.mrf.mxu0 }
 0x407   : > { %933 = vst.msk [vmem:[%s1443_s27] sm:$0xff] %vm932_vm2, %v929_v56  ;;  %945 = vrot.lane.b32.xlu1 %v929_v56, %s1300_s19  ;;  %935 = vrot.lane.b32.xlu0 %v929_v56, %s1301_s28  ;;  %s1206_s19 = sshra.s32 %s974_s15, 4  ;;  %s1207_s19 = int_to_ptr.hbm [resolvable:$true] %s1206_s19 }
 0x408   : > { %s1208_s28 = scalar_lea.hbm %s1207_s19, 40  ;;  %p1213_p5 = scmp.lt.s32.totalorder %s1207_s19, %s1633_s9 }
 0x409   : > { %p1209_p1 = scmp.ne.s32.totalorder %s1207_s19, %s1208_s28  ;;  %p1214_p6 = scmp.lt.s32.totalorder %s1212_s14, %s1208_s28 }
 0x40b   : > { %p1210_p2 = pnand %p1209_p1, %p1408_p3  ;;  %p1215_p7 = por %p1214_p6, %p1213_p5 }
 0x40d   : > { %p1211_p4 = pneg %p1210_p2 }
 0x40f   : > { %950 = vrot.lane.b32.xlu1 %v929_v56, %s1302_s29  ;;  %940 = vrot.lane.b32.xlu0 %v929_v56, %s1303_s21  ;;  %p1216_p9 = pnand %p1215_p7, %p1211_p4 }
 0x479   : > { %v946_v58 = vpop.permute.xlu1 %945  ;;  %v936_v59 = vpop.permute.xlu0 %935 }
 0x47a   : > { %1092 = vst.msk [vmem:[%s1443_s27 + $0x18] sm:$0xff] %vm932_vm2, %v946_v58 }
 0x47b   : > { %1090 = vst.msk [vmem:[%s1443_s27 + $0x8] sm:$0xff] %vm932_vm2, %v936_v59 }
 0x481   : > { %v951_v60 = vpop.permute.xlu1 %950  ;;  %v941_v61 = vpop.permute.xlu0 %940 }
 0x482   : > { %1093 = vst.msk [vmem:[%s1443_s27 + $0x20] sm:$0xff] %vm932_vm2, %v951_v60 }
 0x483   : > { %1091 = vst.msk [vmem:[%s1443_s27 + $0x10] sm:$0xff] %vm932_vm2, %v941_v61 }
 0x484   : > { %1219 = shalt.err (!%p1216_p9)
}
 0x485   : > { %s1304_s27 = smov 128   ;;  %s1305_s26 = smov 256  }
 0x486   : > { %s1306_s17 = smov 8  }
 0x487   : > { %1099 = dma.vmem_to_hbm [thread:$0]  (%p1408_p3), %s972_s18, 640, %s974_s15, %s956_s13, %s1304_s27, %s1305_s26, %s1306_s17  }
 0x488 PF: > { %p1105_p10 = scmp.ge.s32.totalorder %s1286_s16, 2  ;;  %s988_s20 = sand.u32 1, %s1258_s30  }
 0x489   : > { %s989_s12 = scalar_lea.sflag [#allocation5], %s988_s20 }
 0x48a   : > { %p1102_p11 = pnand %p1105_p10, %p1417_p8 }
 0x48c   : > { %p1103_p12 = pneg %p1102_p11 }
 0x48e   : > { %1253 = dma.done.wait (%p1103_p12), %s989_s12, 640  }
 0x48f   : > { %1255 = vsyncadd (%p1103_p12), %s989_s12, 4294966656  ;;  %s22_s16 = sadd.s32 1, %s1286_s16   ;;  %s1647_s19 = sld [smem:[#allocation11_spill]] }
 0x490   : > { %p19_p13 = scmp.ge.s32.totalorder %s22_s16, 6   ;;  %s1648_s12 = sld [smem:[#allocation7_spill]] }
 0x491   : > { %s1649_s13 = sld [smem:[#allocation8_spill]]  ;;  %s1652_s30 = smov %s1262_s10 }
 0x492   : > { %s1650_s14 = sld [smem:[#allocation9_spill]]  ;;  %s1653_s10 = smov %s1266_s11 }
 0x493   : > { %s1651_s15 = sld [smem:[#allocation10_spill]]  ;;  %21 = sbr.rel (!%p19_p13) target bundleno = 5 (0x5), region = 109 }
 0x495   : > { %s1654_s11 = smov %s1647_s19 }
 0x498   :  { %995 = vsyncpa [#allocation5], 1 }
 0x499   :  { %997 = vsyncpa [#allocation5 + $0x1], 1 }

</bundles_post_ra>
